<compile_context>
chip_gen: v7x
topology: tpu7x:2x2x1
jax: 0.10.0
libtpu: 0.0.40
codegen_flags: <defaults>
</compile_context>

<pallas_src>
import functools
import math

import jax
import jax.numpy as jnp
from jax import lax
from jax.experimental import pallas as pl
from jax.experimental.pallas import tpu as pltpu


def _flash_mha_kernel(q_ref, k_ref, v_ref, w0_ref, b0_ref, o_ref,
                      m_scr, l_scr, acc_scr, out_scr, *, compute_dtype):
    """One grid step == (batch b, q-tile i, head hh, kv-tile j).

    Online (flash) softmax along the kv axis; at the last kv step the head's
    normalized context is folded straight into the output projection through
    that head's (d, d_model) slice of W0 and accumulated across heads in an
    f32 (tq, d_model) scratch. The HBM output is written once per (b, i).
    """
    hh = pl.program_id(2)
    kv = pl.program_id(3)
    last_h = pl.num_programs(2) - 1
    last_kv = pl.num_programs(3) - 1

    @pl.when(kv == 0)
    def _init_head_state():
        m_scr[...] = jnp.full_like(m_scr, -jnp.inf)
        l_scr[...] = jnp.zeros_like(l_scr)
        acc_scr[...] = jnp.zeros_like(acc_scr)

    @pl.when(jnp.logical_and(kv == 0, hh == 0))
    def _init_out_acc():
        out_scr[...] = jnp.zeros_like(out_scr)

    q = q_ref[0, 0]     # (tq, d)  compute_dtype; 1/sqrt(d) pre-folded into Wq
    k = k_ref[0, 0]     # (tk, d)
    v = v_ref[0, 0]     # (tk, d)

    # Q @ K^T without materializing a transpose: contract the last axes.
    s = lax.dot_general(q, k, (((1,), (1,)), ((), ())),
                        preferred_element_type=jnp.float32)          # (tq, tk)

    # Online softmax update (f32 state in scratch).
    m_prev = m_scr[...]                                              # (tq, 1)
    m_new = jnp.maximum(m_prev, jnp.max(s, axis=-1, keepdims=True))
    alpha = jnp.exp(m_prev - m_new)
    p = jnp.exp(s - m_new)                                           # (tq, tk)
    l_scr[...] = alpha * l_scr[...] + jnp.sum(p, axis=-1, keepdims=True)
    acc_scr[...] = alpha * acc_scr[...] + jnp.dot(
        p.astype(compute_dtype), v, preferred_element_type=jnp.float32)
    m_scr[...] = m_new

    @pl.when(kv == last_kv)
    def _finalize_head():
        inv_l = pl.reciprocal(l_scr[...], approx=True)               # EUP slot
        ctx = (acc_scr[...] * inv_l).astype(compute_dtype)           # (tq, d)
        # Fused, lane-dense output projection for this head:
        # (tq, d) @ (d, d_model), accumulated across heads in f32.
        out_scr[...] += jnp.dot(ctx, w0_ref[0],
                                preferred_element_type=jnp.float32)

        @pl.when(hh == last_h)
        def _write_output():
            o_ref[0] = (out_scr[...] + b0_ref[...]).astype(o_ref.dtype)


def _tile_candidates(n, prefs=(512, 256, 128, 64)):
    """Preferred tile sizes that evenly divide `n` (largest preference first)."""
    cands = [t for t in prefs if n % t == 0]
    if cands:
        return cands
    for t in range(min(n, prefs[0]), 7, -1):   # largest divisor, multiple of 8
        if n % t == 0 and t % 8 == 0:
            return [t]
    return [n]


def multi_head_attention(q, k, v, wq_t, wk_t, wv_t, w0_t, b0, *, h,
                         compute_dtype=jnp.bfloat16):
    """q, k, v: (N, seq, d_model). w*_t: (d_model, d_model) pre-transposed
    (in_features, out_features). b0: (1, d_model). Returns (N, seqq, d_model)
    in q.dtype."""
    N, seqq, d_model = q.shape
    seqk, seqv = k.shape[1], v.shape[1]
    assert d_model % h == 0, "d_model must be divisible by h"
    assert seqk == seqv, "attention requires matching key/value lengths"
    d = d_model // h
    out_dtype = q.dtype
    cd = compute_dtype

    # ---- Projections as plain XLA GEMMs, done ONCE (not per q-tile). --------
    scale = 1.0 / math.sqrt(d)
    qc, kc, vc = q.astype(cd), k.astype(cd), v.astype(cd)
    Qp = jnp.dot(qc, (wq_t * scale).astype(cd),
                 preferred_element_type=jnp.float32).astype(cd)
    Kp = jnp.dot(kc, wk_t.astype(cd),
                 preferred_element_type=jnp.float32).astype(cd)
    Vp = jnp.dot(vc, wv_t.astype(cd),
                 preferred_element_type=jnp.float32).astype(cd)

    # Split heads outside the kernel: (N, seq, d_model) -> (N, h, seq, d) so the
    # kernel sees contiguous per-head slabs (dense DMAs, no column slicing).
    Qp = Qp.reshape(N, seqq, h, d).transpose(0, 2, 1, 3)
    Kp = Kp.reshape(N, seqk, h, d).transpose(0, 2, 1, 3)
    Vp = Vp.reshape(N, seqv, h, d).transpose(0, 2, 1, 3)

    # Output projection weight split per head: (d_model, d_model) -> (h, d, d_model).
    w0h = w0_t.reshape(h, d, d_model).astype(cd)
    b0f = b0.reshape(1, d_model).astype(jnp.float32)

    # ---- Tile selection bounded by physical VMEM (v7x: 64 MiB). -------------
    try:
        vmem_cap = int(pltpu.get_tpu_info().vmem_capacity_bytes)
    except Exception:                       # interpret mode / unknown chip
        vmem_cap = 64 * 2**20
    budget = int(0.85 * vmem_cap)

    cs = jnp.dtype(cd).itemsize
    osz = jnp.dtype(out_dtype).itemsize

    def _lane(x):                            # lane (last-dim) padding
        return -(-x // 128) * 128

    def _sub(x):                             # sublane padding
        return -(-x // 8) * 8

    def _footprint(tq_, tk_):
        blocks = 2 * (_sub(tq_) * _lane(d) * cs           # Q tile (dbl-buffered)
                      + 2 * _sub(tk_) * _lane(d) * cs     # K, V tiles
                      + _sub(tq_) * _lane(d_model) * osz  # output tile
                      + _sub(d) * _lane(d_model) * cs     # W0 head slice
                      + 8 * _lane(d_model) * 4)           # bias
        scratch = (2 * _sub(tq_) * 128 * 4                # m, l
                   + _sub(tq_) * _lane(d) * 4             # per-head context acc
                   + _sub(tq_) * _lane(d_model) * 4)      # output accumulator
        temps = 4 * _sub(tq_) * _lane(tk_) * 4            # s / p / exp temps (f32)
        return blocks + scratch + temps

    q_cands = _tile_candidates(seqq)
    k_cands = _tile_candidates(seqk)
    tq, tk = min(q_cands), min(k_cands)                   # fallback: smallest tiles
    done = False
    for tq_c in q_cands:                                  # prefer the largest pair
        for tk_c in k_cands:
            if _footprint(tq_c, tk_c) <= budget:
                tq, tk, done = tq_c, tk_c, True
                break
        if done:
            break

    vmem_limit = min(max(int(1.4 * _footprint(tq, tk)), 32 * 2**20), budget)

    grid = (N, seqq // tq, h, seqk // tk)
    kernel = functools.partial(_flash_mha_kernel, compute_dtype=cd)

    return pl.pallas_call(
        kernel,
        out_shape=jax.ShapeDtypeStruct((N, seqq, d_model), out_dtype),
        grid_spec=pltpu.PrefetchScalarGridSpec(
            num_scalar_prefetch=0,
            grid=grid,
            in_specs=[
                pl.BlockSpec((1, 1, tq, d), lambda b, i, hh, j: (b, hh, i, 0)),
                pl.BlockSpec((1, 1, tk, d), lambda b, i, hh, j: (b, hh, j, 0)),
                pl.BlockSpec((1, 1, tk, d), lambda b, i, hh, j: (b, hh, j, 0)),
                pl.BlockSpec((1, d, d_model), lambda b, i, hh, j: (hh, 0, 0)),
                pl.BlockSpec((1, d_model), lambda b, i, hh, j: (0, 0)),
            ],
            # Output block is a resident accumulator across the head & kv axes.
            out_specs=pl.BlockSpec((1, tq, d_model), lambda b, i, hh, j: (b, i, 0)),
            scratch_shapes=[
                pltpu.VMEM((tq, 1), jnp.float32),        # running max  m
                pltpu.VMEM((tq, 1), jnp.float32),        # running sum  l
                pltpu.VMEM((tq, d), jnp.float32),        # per-head context acc
                pltpu.VMEM((tq, d_model), jnp.float32),  # output-projection acc
            ],
        ),
        compiler_params=pltpu.CompilerParams(
            # batch / q-tiles parallel (megacore); head & kv axes carry resident
            # accumulators -> arbitrary. TODO(synk): for N == 1 with a single
            # q-tile on v7x, split the output projection out of the kernel so
            # heads can become a parallel axis (both TensorCores busy).
            dimension_semantics=("parallel", "parallel", "arbitrary", "arbitrary"),
            vmem_limit_bytes=vmem_limit),
    )(Qp, Kp, Vp, w0h, b0f)


def _reference(q, k, v, wq_t, wk_t, wv_t, w0_t, b0, *, h):
    """Pure-JAX f32 reference mirroring the PyTorch forward (mask=None, eval)."""
    N, seqq, d_model = q.shape
    d = d_model // h
    Q = q @ wq_t
    K = k @ wk_t
    V = v @ wv_t
    Q = Q.reshape(N, seqq, h, d).transpose(0, 2, 1, 3)
    K = K.reshape(N, K.shape[1], h, d).transpose(0, 2, 1, 3)
    V = V.reshape(N, V.shape[1], h, d).transpose(0, 2, 1, 3)
    scores = jnp.einsum("nhqd,nhkd->nhqk", Q, K) / math.sqrt(d)
    probs = jax.nn.softmax(scores, axis=-1)
    out = jnp.einsum("nhqk,nhkd->nhqd", probs, V)
    out = out.transpose(0, 2, 1, 3).reshape(N, seqq, h * d)
    return out @ w0_t + b0


if __name__ == "__main__":
    # Small shapes consistent with the module.
    N, seq, d_model, h = 2, 8, 32, 4

    key = jax.random.PRNGKey(0)
    kq, kk, kv, kwq, kwk, kwv, kw0, kb0 = jax.random.split(key, 8)

    q = jax.random.normal(kq, (N, seq, d_model), dtype=jnp.float32)
    k = jax.random.normal(kk, (N, seq, d_model), dtype=jnp.float32)
    v = jax.random.normal(kv, (N, seq, d_model), dtype=jnp.float32)

    # nn.Linear-like init: U(-1/sqrt(in), 1/sqrt(in)); stored transposed
    # (in_features, out_features) so projections are `x @ W`.
    bound = 1.0 / math.sqrt(d_model)
    wq_t = jax.random.uniform(kwq, (d_model, d_model), jnp.float32, -bound, bound)
    wk_t = jax.random.uniform(kwk, (d_model, d_model), jnp.float32, -bound, bound)
    wv_t = jax.random.uniform(kwv, (d_model, d_model), jnp.float32, -bound, bound)
    w0_t = jax.random.uniform(kw0, (d_model, d_model), jnp.float32, -bound, bound)
    b0   = jax.random.uniform(kb0, (1, d_model), jnp.float32, -bound, bound)

    out = multi_head_attention(q, k, v, wq_t, wk_t, wv_t, w0_t, b0, h=h)
    out = jax.block_until_ready(out)

    ref = _reference(q, k, v, wq_t, wk_t, wv_t, w0_t, b0, h=h)
    assert out.shape == (N, seq, d_model)
    # bf16 matmul operands (f32 accumulation) + approx reciprocal -> loosen
    # tolerance vs. the pure-f32 reference.
    assert jnp.allclose(out, ref, atol=3e-2, rtol=3e-2), float(
        jnp.max(jnp.abs(out - ref)))

    print("KERNEL_OK")
</pallas_src>

<mosaic_0001>
module attributes {stable_mosaic.version = 11 : i64} {
  func.func @_flash_mha_kernel(%arg0: i32, %arg1: i32, %arg2: i32, %arg3: i32, %arg4: memref<1x1x8x8xbf16, #tpu.memory_space<vmem>>, %arg5: memref<1x1x8x8xbf16, #tpu.memory_space<vmem>>, %arg6: memref<1x1x8x8xbf16, #tpu.memory_space<vmem>>, %arg7: memref<1x8x32xbf16, #tpu.memory_space<vmem>>, %arg8: memref<1x32xf32, #tpu.memory_space<vmem>>, %arg9: memref<1x8x32xf32, #tpu.memory_space<vmem>>, %arg10: memref<8x1xf32, #tpu.memory_space<vmem>>, %arg11: memref<8x1xf32, #tpu.memory_space<vmem>>, %arg12: memref<8x8xf32, #tpu.memory_space<vmem>>, %arg13: memref<8x32xf32, #tpu.memory_space<vmem>>) attributes {dimension_semantics = [#tpu.dimension_semantics<parallel>, #tpu.dimension_semantics<parallel>, #tpu.dimension_semantics<arbitrary>, #tpu.dimension_semantics<arbitrary>], iteration_bounds = array<i64: 2, 1, 4, 1>, scalar_prefetch = 0 : i64, scratch_operands = 4 : i64, tpu.core_type = #tpu.core_type<tc>, window_params = [{transform_indices = @transform_0, window_bounds = array<i64: 1, 1, 8, 8>}, {transform_indices = @transform_1, window_bounds = array<i64: 1, 1, 8, 8>}, {transform_indices = @transform_2, window_bounds = array<i64: 1, 1, 8, 8>}, {transform_indices = @transform_3, window_bounds = array<i64: 1, 8, 32>}, {pipeline_mode = #tpu.pipeline_mode<synchronous>, transform_indices = @transform_4, window_bounds = array<i64: 1, 32>}, {transform_indices = @transform_5, window_bounds = array<i64: 1, 8, 32>}]} {
    %c0_i32 = arith.constant 0 : i32
    %0 = arith.cmpi eq, %arg3, %c0_i32 : i32
    %1 = arith.extui %0 : i1 to i32
    %c0_i32_0 = arith.constant 0 : i32
    %2 = arith.cmpi ne, %1, %c0_i32_0 : i32
    scf.if %2 {
      %cst_32 = arith.constant 0xFF800000 : f32
      %41 = vector.broadcast %cst_32 : f32 to vector<8x1xf32>
      %c0_33 = arith.constant 0 : index
      %c0_34 = arith.constant 0 : index
      %42 = vector.load %arg10[%c0_33, %c0_34] : memref<8x1xf32, #tpu.memory_space<vmem>>, vector<8x1xf32>
      tpu.vector_store %arg10[%c0_33, %c0_34], %41 {strides = array<i32>} : memref<8x1xf32, #tpu.memory_space<vmem>>, vector<8x1xf32>,
      %cst_35 = arith.constant 0.000000e+00 : f32
      %43 = vector.broadcast %cst_35 : f32 to vector<8x1xf32>
      %c0_36 = arith.constant 0 : index
      %c0_37 = arith.constant 0 : index
      %44 = vector.load %arg11[%c0_36, %c0_37] : memref<8x1xf32, #tpu.memory_space<vmem>>, vector<8x1xf32>
      tpu.vector_store %arg11[%c0_36, %c0_37], %43 {strides = array<i32>} : memref<8x1xf32, #tpu.memory_space<vmem>>, vector<8x1xf32>,
      %cst_38 = arith.constant 0.000000e+00 : f32
      %45 = vector.broadcast %cst_38 : f32 to vector<8x8xf32>
      %c0_39 = arith.constant 0 : index
      %c0_40 = arith.constant 0 : index
      %46 = vector.load %arg12[%c0_39, %c0_40] : memref<8x8xf32, #tpu.memory_space<vmem>>, vector<8x8xf32>
      tpu.vector_store %arg12[%c0_39, %c0_40], %45 {strides = array<i32>} : memref<8x8xf32, #tpu.memory_space<vmem>>, vector<8x8xf32>,
    } else {
    }
    %c0_i32_1 = arith.constant 0 : i32
    %3 = arith.cmpi eq, %arg3, %c0_i32_1 : i32
    %c0_i32_2 = arith.constant 0 : i32
    %4 = arith.cmpi eq, %arg2, %c0_i32_2 : i32
    %5 = arith.andi %3, %4 : i1
    %6 = arith.extui %5 : i1 to i32
    %c0_i32_3 = arith.constant 0 : i32
    %7 = arith.cmpi ne, %6, %c0_i32_3 : i32
    scf.if %7 {
      %cst_32 = arith.constant 0.000000e+00 : f32
      %41 = vector.broadcast %cst_32 : f32 to vector<8x32xf32>
      %c0_33 = arith.constant 0 : index
      %c0_34 = arith.constant 0 : index
      %42 = vector.load %arg13[%c0_33, %c0_34] : memref<8x32xf32, #tpu.memory_space<vmem>>, vector<8x32xf32>
      tpu.vector_store %arg13[%c0_33, %c0_34], %41 {strides = array<i32>} : memref<8x32xf32, #tpu.memory_space<vmem>>, vector<8x32xf32>,
    } else {
    }
    %c0 = arith.constant 0 : index
    %c0_4 = arith.constant 0 : index
    %c0_5 = arith.constant 0 : index
    %c0_6 = arith.constant 0 : index
    %8 = vector.load %arg4[%c0, %c0_4, %c0_5, %c0_6] : memref<1x1x8x8xbf16, #tpu.memory_space<vmem>>, vector<1x1x8x8xbf16>
    %9 = vector.shape_cast %8 : vector<1x1x8x8xbf16> to vector<8x8xbf16>
    %c0_7 = arith.constant 0 : index
    %c0_8 = arith.constant 0 : index
    %c0_9 = arith.constant 0 : index
    %c0_10 = arith.constant 0 : index
    %10 = vector.load %arg5[%c0_7, %c0_8, %c0_9, %c0_10] : memref<1x1x8x8xbf16, #tpu.memory_space<vmem>>, vector<1x1x8x8xbf16>
    %11 = vector.shape_cast %10 : vector<1x1x8x8xbf16> to vector<8x8xbf16>
    %c0_11 = arith.constant 0 : index
    %c0_12 = arith.constant 0 : index
    %c0_13 = arith.constant 0 : index
    %c0_14 = arith.constant 0 : index
    %12 = vector.load %arg6[%c0_11, %c0_12, %c0_13, %c0_14] : memref<1x1x8x8xbf16, #tpu.memory_space<vmem>>, vector<1x1x8x8xbf16>
    %13 = vector.shape_cast %12 : vector<1x1x8x8xbf16> to vector<8x8xbf16>
    %cst = arith.constant dense<0.000000e+00> : vector<8x8xf32>
    %14 = tpu.matmul %9, %11, %cst {dimension_numbers = #tpu.dot_dimension_numbers<[1], [1], [0], [0], [0, 0, 1, 0], [], []>} : vector<8x8xbf16>, vector<8x8xbf16>, vector<8x8xf32> -> vector<8x8xf32>
    %c0_15 = arith.constant 0 : index
    %c0_16 = arith.constant 0 : index
    %15 = vector.load %arg10[%c0_15, %c0_16] : memref<8x1xf32, #tpu.memory_space<vmem>>, vector<8x1xf32>
    %cst_17 = arith.constant dense<0xFF800000> : vector<8xf32>
    %16 = vector.multi_reduction <maximumf>, %14, %cst_17 [1] : vector<8x8xf32> to vector<8xf32>
    %17 = vector.shape_cast %16 : vector<8xf32> to vector<8x1xf32>
    %18 = arith.maximumf %15, %17 : vector<8x1xf32>
    %19 = arith.subf %15, %18 : vector<8x1xf32>
    %20 = math.exp %19 : vector<8x1xf32>
    %21 = vector.broadcast %18 : vector<8x1xf32> to vector<8x8xf32>
    %22 = arith.subf %14, %21 : vector<8x8xf32>
    %23 = math.exp %22 : vector<8x8xf32>
    %c0_18 = arith.constant 0 : index
    %c0_19 = arith.constant 0 : index
    %24 = vector.load %arg11[%c0_18, %c0_19] : memref<8x1xf32, #tpu.memory_space<vmem>>, vector<8x1xf32>
    %25 = arith.mulf %20, %24 : vector<8x1xf32>
    %cst_20 = arith.constant dense<0.000000e+00> : vector<8xf32>
    %26 = vector.multi_reduction <add>, %23, %cst_20 [1] : vector<8x8xf32> to vector<8xf32>
    %27 = vector.shape_cast %26 : vector<8xf32> to vector<8x1xf32>
    %28 = arith.addf %25, %27 : vector<8x1xf32>
    %c0_21 = arith.constant 0 : index
    %c0_22 = arith.constant 0 : index
    %29 = vector.load %arg11[%c0_21, %c0_22] : memref<8x1xf32, #tpu.memory_space<vmem>>, vector<8x1xf32>
    tpu.vector_store %arg11[%c0_21, %c0_22], %28 {strides = array<i32>} : memref<8x1xf32, #tpu.memory_space<vmem>>, vector<8x1xf32>,
    %c0_23 = arith.constant 0 : index
    %c0_24 = arith.constant 0 : index
    %30 = vector.load %arg12[%c0_23, %c0_24] : memref<8x8xf32, #tpu.memory_space<vmem>>, vector<8x8xf32>
    %31 = vector.broadcast %20 : vector<8x1xf32> to vector<8x8xf32>
    %32 = arith.mulf %31, %30 : vector<8x8xf32>
    %33 = arith.truncf %23 : vector<8x8xf32> to vector<8x8xbf16>
    %cst_25 = arith.constant dense<0.000000e+00> : vector<8x8xf32>
    %34 = tpu.matmul %33, %13, %cst_25 {dimension_numbers = #tpu.dot_dimension_numbers<[1], [0], [0], [1], [0, 0, 1, 1], [], []>} : vector<8x8xbf16>, vector<8x8xbf16>, vector<8x8xf32> -> vector<8x8xf32>
    %35 = arith.addf %32, %34 : vector<8x8xf32>
    %c0_26 = arith.constant 0 : index
    %c0_27 = arith.constant 0 : index
    %36 = vector.load %arg12[%c0_26, %c0_27] : memref<8x8xf32, #tpu.memory_space<vmem>>, vector<8x8xf32>
    tpu.vector_store %arg12[%c0_26, %c0_27], %35 {strides = array<i32>} : memref<8x8xf32, #tpu.memory_space<vmem>>, vector<8x8xf32>,
    %c0_28 = arith.constant 0 : index
    %c0_29 = arith.constant 0 : index
    %37 = vector.load %arg10[%c0_28, %c0_29] : memref<8x1xf32, #tpu.memory_space<vmem>>, vector<8x1xf32>
    tpu.vector_store %arg10[%c0_28, %c0_29], %18 {strides = array<i32>} : memref<8x1xf32, #tpu.memory_space<vmem>>, vector<8x1xf32>,
    %c0_i32_30 = arith.constant 0 : i32
    %38 = arith.cmpi eq, %arg3, %c0_i32_30 : i32
    %39 = arith.extui %38 : i1 to i32
    %c0_i32_31 = arith.constant 0 : i32
    %40 = arith.cmpi ne, %39, %c0_i32_31 : i32
    scf.if %40 {
      %c0_32 = arith.constant 0 : index
      %c0_33 = arith.constant 0 : index
      %41 = vector.load %arg11[%c0_32, %c0_33] : memref<8x1xf32, #tpu.memory_space<vmem>>, vector<8x1xf32>
      %42 = tpu.reciprocal %41 {approx = true} : vector<8x1xf32> -> vector<8x1xf32>
      %c0_34 = arith.constant 0 : index
      %c0_35 = arith.constant 0 : index
      %43 = vector.load %arg12[%c0_34, %c0_35] : memref<8x8xf32, #tpu.memory_space<vmem>>, vector<8x8xf32>
      %44 = vector.broadcast %42 : vector<8x1xf32> to vector<8x8xf32>
      %45 = arith.mulf %43, %44 : vector<8x8xf32>
      %46 = arith.truncf %45 : vector<8x8xf32> to vector<8x8xbf16>
      %c0_36 = arith.constant 0 : index
      %c0_37 = arith.constant 0 : index
      %47 = vector.load %arg13[%c0_36, %c0_37] : memref<8x32xf32, #tpu.memory_space<vmem>>, vector<8x32xf32>
      %c0_38 = arith.constant 0 : index
      %c0_39 = arith.constant 0 : index
      %c0_40 = arith.constant 0 : index
      %48 = vector.load %arg7[%c0_38, %c0_39, %c0_40] : memref<1x8x32xbf16, #tpu.memory_space<vmem>>, vector<1x8x32xbf16>
      %49 = vector.shape_cast %48 : vector<1x8x32xbf16> to vector<8x32xbf16>
      %cst_41 = arith.constant dense<0.000000e+00> : vector<8x32xf32>
      %50 = tpu.matmul %46, %49, %cst_41 {dimension_numbers = #tpu.dot_dimension_numbers<[1], [0], [0], [1], [0, 0, 1, 1], [], []>} : vector<8x8xbf16>, vector<8x32xbf16>, vector<8x32xf32> -> vector<8x32xf32>
      %51 = arith.addf %47, %50 : vector<8x32xf32>
      %c0_42 = arith.constant 0 : index
      %c0_43 = arith.constant 0 : index
      %52 = vector.load %arg13[%c0_42, %c0_43] : memref<8x32xf32, #tpu.memory_space<vmem>>, vector<8x32xf32>
      tpu.vector_store %arg13[%c0_42, %c0_43], %51 {strides = array<i32>} : memref<8x32xf32, #tpu.memory_space<vmem>>, vector<8x32xf32>,
      %c3_i32 = arith.constant 3 : i32
      %53 = arith.cmpi eq, %arg2, %c3_i32 : i32
      %54 = arith.extui %53 : i1 to i32
      %c0_i32_44 = arith.constant 0 : i32
      %55 = arith.cmpi ne, %54, %c0_i32_44 : i32
      scf.if %55 {
        %c0_45 = arith.constant 0 : index
        %c0_46 = arith.constant 0 : index
        %56 = vector.load %arg13[%c0_45, %c0_46] : memref<8x32xf32, #tpu.memory_space<vmem>>, vector<8x32xf32>
        %c0_47 = arith.constant 0 : index
        %c0_48 = arith.constant 0 : index
        %57 = vector.load %arg8[%c0_47, %c0_48] : memref<1x32xf32, #tpu.memory_space<vmem>>, vector<1x32xf32>
        %58 = vector.broadcast %57 : vector<1x32xf32> to vector<8x32xf32>
        %59 = arith.addf %56, %58 : vector<8x32xf32>
        %c0_49 = arith.constant 0 : index
        %c0_50 = arith.constant 0 : index
        %c0_51 = arith.constant 0 : index
        %60 = vector.load %arg9[%c0_49, %c0_50, %c0_51] : memref<1x8x32xf32, #tpu.memory_space<vmem>>, vector<1x8x32xf32>
        %61 = vector.shape_cast %60 : vector<1x8x32xf32> to vector<8x32xf32>
        %62 = vector.shape_cast %59 : vector<8x32xf32> to vector<1x8x32xf32>
        tpu.vector_store %arg9[%c0_49, %c0_50, %c0_51], %62 {strides = array<i32>} : memref<1x8x32xf32, #tpu.memory_space<vmem>>, vector<1x8x32xf32>,
      } else {
      }
    } else {
    }
    return
  }
  func.func @transform_0(%arg0: i32, %arg1: i32, %arg2: i32, %arg3: i32) -> (i32, i32, i32, i32) {
    %c0_i32 = arith.constant 0 : i32
    %c0_i32_0 = arith.constant 0 : i32
    return %arg0, %arg2, %arg1, %c0_i32 : i32, i32, i32, i32
  }
  func.func @transform_1(%arg0: i32, %arg1: i32, %arg2: i32, %arg3: i32) -> (i32, i32, i32, i32) {
    %c0_i32 = arith.constant 0 : i32
    %c0_i32_0 = arith.constant 0 : i32
    return %arg0, %arg2, %arg3, %c0_i32 : i32, i32, i32, i32
  }
  func.func @transform_2(%arg0: i32, %arg1: i32, %arg2: i32, %arg3: i32) -> (i32, i32, i32, i32) {
    %c0_i32 = arith.constant 0 : i32
    %c0_i32_0 = arith.constant 0 : i32
    return %arg0, %arg2, %arg3, %c0_i32 : i32, i32, i32, i32
  }
  func.func @transform_3(%arg0: i32, %arg1: i32, %arg2: i32, %arg3: i32) -> (i32, i32, i32) {
    %c0_i32 = arith.constant 0 : i32
    %c0_i32_0 = arith.constant 0 : i32
    %c0_i32_1 = arith.constant 0 : i32
    return %arg2, %c0_i32, %c0_i32_0 : i32, i32, i32
  }
  func.func @transform_4(%arg0: i32, %arg1: i32, %arg2: i32, %arg3: i32) -> (i32, i32) {
    %c0_i32 = arith.constant 0 : i32
    %c0_i32_0 = arith.constant 0 : i32
    %c0_i32_1 = arith.constant 0 : i32
    return %c0_i32, %c0_i32_0 : i32, i32
  }
  func.func @transform_5(%arg0: i32, %arg1: i32, %arg2: i32, %arg3: i32) -> (i32, i32, i32) {
    %c0_i32 = arith.constant 0 : i32
    %c0_i32_0 = arith.constant 0 : i32
    return %arg0, %arg1, %c0_i32 : i32, i32, i32
  }
}

</mosaic_0001>

<bundles_post_ra>
// kernel: tpu_custom_call.1
= control target key start
LH: loop header
LB: loop body
LE: loop exit
PB: predicated region body
PF: predicated region fallthrough
CT: control target
= control target key end

     0   :  { %s1766_s0 = inlined_call_operand.hbm [shape: bf16[2,4,8,8], index: 0, kind: input, shape index: {}]   ;;  %s1767_s1 = inlined_call_operand.hbm [shape: bf16[2,4,8,8], index: 1, kind: input, shape index: {}]   ;;  %s1768_s2 = inlined_call_operand.hbm [shape: bf16[2,4,8,8], index: 2, kind: input, shape index: {}]   ;;  %s1769_s3 = inlined_call_operand.hbm [shape: bf16[4,8,32], index: 3, kind: input, shape index: {}]   ;;  %s1770_s4 = inlined_call_operand.vmem [shape: f32[1,32], index: 4, kind: input, shape index: {}]   ;;  %s1771_s5 = inlined_call_operand.hbm [shape: f32[2,8,32], index: 5, kind: output, shape index: {}]  }
   0x1   :  { %1790 = sst [smem:[#allocation31_spill]] %s1767_s1 }
   0x2   :  { %1791 = sst [smem:[#allocation32_spill]] %s1770_s4 }
   0x3   :  { %1792 = sst [smem:[#allocation33_spill]] %s1771_s5 }
   0x4   :  { %10 = vsyncpa [#allocation7], 0 }
   0x5   :  { %12 = vsyncpa [#allocation7 + $0x1], 0 }
   0x6   :  { %13 = vsyncpa [#allocation10], 0 }
   0x7   :  { %15 = vsyncpa [#allocation10 + $0x1], 0 }
   0x8   :  { %16 = vsyncpa [#allocation13], 0 }
   0x9   :  { %18 = vsyncpa [#allocation13 + $0x1], 0 }
   0xa   :  { %19 = vsyncpa [#allocation8], 0 }
   0xb   :  { %21 = vsyncpa [#allocation8 + $0x1], 0  ;;  %s1328_s18 = smov 0   ;;  %s1330_s19 = smov 0  }
   0xc   :  { %s1332_s20 = smov 0   ;;  %s1334_s21 = smov 0  }
   0xd   :  { %s1336_s22 = smov 0   ;;  %s1338_s23 = smov 0  }
   0xe   :  { %s1340_s24 = smov 0   ;;  %s1342_s25 = smov 0  }
   0xf   :  { %s1344_s26 = smov 0   ;;  %s1346_s27 = smov 0  }
  0x10   :  { %s1348_s28 = smov 0   ;;  %s1350_s29 = smov 0  }
  0x11   :  { %s1352_s30 = smov 0   ;;  %s1354_s6 = smov 0  }
  0x12 LB: > { %1793 = sst [smem:[#allocation19_spill]] %s1234_s18  ;;  %s1397_s7 = sadd.s32 4294967295, %s1286_s6   ;;  %s1286_s6 = sphi %s1354_s6, %s27_s6   ;;  %s1282_s30 = sphi %s1352_s30, %s1854_s30   ;;  %s1278_s29 = sphi %s1350_s29, %s1853_s29   ;;  %s1274_s28 = sphi %s1348_s28, %s1841_s28   ;;  %s1270_s27 = sphi %s1346_s27, %s1852_s27   ;;  %s1266_s26 = sphi %s1344_s26, %s1840_s26   ;;  %s1262_s25 = sphi %s1342_s25, %s1851_s25   ;;  %s1258_s24 = sphi %s1340_s24, %s1850_s24   ;;  %s1254_s23 = sphi %s1338_s23, %s1849_s23   ;;  %s1250_s22 = sphi %s1336_s22, %s1848_s22   ;;  %s1246_s21 = sphi %s1334_s21, %s1847_s21   ;;  %s1242_s20 = sphi %s1332_s20, %s1838_s20   ;;  %s1238_s19 = sphi %s1330_s19, %s1846_s19   ;;  %s1234_s18 = sphi %s1328_s18, %s1845_s18  }
  0x13   : > { %1794 = sst [smem:[#allocation20_spill]] %s1242_s20  ;;  %s803_s8 = sadd.s32 4294967294, %s1286_s6  }
  0x14   : > { %1795 = sst [smem:[#allocation21_spill]] %s1266_s26  ;;  %s45_s9 = sadd.s32 1, %s1278_s29 }
  0x15   : > { %1796 = sst [smem:[#allocation22_spill]] %s1270_s27  ;;  %s53_s10 = sadd.s32 1, %s1282_s30 }
  0x16   : > { %1797 = sst [smem:[#allocation23_spill]] %s1274_s28  ;;  %p47_p0 = scmp.ge.s32.totalorder %s45_s9, 4 }
  0x17   : > { %1798 = sst [smem:[#allocation24_spill]] %s1282_s30  ;;  %s64_s11 = sadd.s32 1, %s1266_s26 }
  0x18   : > { %p71_p1 = scmp.ne.s32.totalorder %s1266_s26, %s1262_s25  ;;  %p1784_p2 = scmp.eq.s32.totalorder %s1286_s6, 0 }
  0x19   : > { %s1856_s9 = smov (%p47_p0, %s45_s9), 0  ;;  %s1858_s10 = smov (!%p47_p0, %s53_s10), %s1282_s30 }
  0x1a   : > { %1799 = sst [smem:[#allocation25_spill]] %s1856_s9  ;;  %s1411_s12 = ssub.s32 %s1278_s29, %s1856_s9 }
  0x1b   : > { %p1415_p3 = por %p1784_p2, %p71_p1  ;;  %p55_p4 = scmp.ge.s32.totalorder %s1858_s10, 2 }
  0x1c   : > { %p77_p5 = scmp.ne.s32.totalorder %s1262_s25, %s1258_s24  ;;  %p1783_p6 = scmp.eq.s32.totalorder %s1397_s7, 0 }
  0x1d   : > { %s1860_s10 = smov (%p55_p4, %s1858_s10), 0  ;;  %s199_s15 = sadd.s32 1, %s1242_s20 }
  0x1e   : > { %1801 = sst [smem:[#allocation26_spill]] %s1860_s10  ;;  %p1426_p8 = por %p1783_p6, %p77_p5 }
  0x1f   : > { %s57_s16 = ssub.s32 %s1282_s30, %s1860_s10  ;;  %p209_p9 = scmp.ne.s32.totalorder %s1242_s20, %s1238_s19 }
  0x20   : > { %s1802_s14 = scalar_select %p1426_p8, 1, 0 }
  0x21   : > { %s59_s17 = sor.u32 %s1411_s12, %s57_s16  ;;  %p197_p10 = scmp.eq.s32.totalorder %s57_s16, 0 }
  0x22   : > { %p62_p11 = scmp.eq.s32.totalorder %s59_s17, 0  ;;  %p210_p12 = scmp.eq.s32.totalorder %s1397_s7, 7 }
  0x23   : > { %s1438_s24 = scalar_select %p197_p10, %s1242_s20, %s199_s15  }
  0x24   : > { %s1441_s9 = scalar_select %p62_p11, %s1266_s26, %s64_s11  }
  0x25   : > { %1803 = sst [smem:[#allocation27_spill]] %s1438_s24  ;;  %p1443_p13 = por %p210_p12, %p209_p9 }
  0x26   : > { %1804 = sst [smem:[#allocation28_spill]] %s1441_s9  ;;  %p215_p0 = scmp.ne.s32.totalorder %s1238_s19, %s1234_s18 }
  0x27   : > { %s1805_s5 = scalar_select %p1443_p13, 1, 0 }
  0x28   : > { %p216_p1 = scmp.eq.s32.totalorder %s803_s8, 7  ;;  %p1782_p4 = scmp.lt.s32.totalorder %s1286_s6, 8 }
  0x29   : > { %1806 = sst [smem:[#allocation29_spill]] %s1805_s5  ;;  %s1777_s10 = sand.u32 1, %s1266_s26  }
  0x2a   : > { %p1451_p5 = por %p216_p1, %p215_p0  ;;  %s1457_s16 = sshll.u32 %s1777_s10, 2 }
  0x2b   : > { %s807_s15 = sshll.u32 %s1282_s30, 2  ;;  %p1464_p9 = pnand %p1782_p4, %p1415_p3 }
  0x2c   : > { %s1807_s28 = scalar_select %p1451_p5, 1, 0 }
  0x2d   : > { %s1809_s11 = scalar_select %p1464_p9, 1, 0 }
  0x2e   : > { %1808 = sst [smem:[#allocation30_spill]] %s1807_s28  ;;  %s249_s17 = sadd.s32 %s1278_s29, %s807_s15 }
  0x2f   : > { %s260_s8 = sand.u32 1, %s1286_s6   ;;  %s1470_s9 = sshll.u32 %s249_s17, 6 }
  0x30   : > { %s1810_s1 = sld [smem:[#allocation31_spill]]  ;;  %s264_s13 = scalar_lea.vmem [#allocation9], %s1457_s16 }
  0x31   : > { %s274_s10 = sshll.u32 %s264_s13, 4  ;;  %s1482_s30 = scalar_lea.sflag [#allocation10], %s260_s8  ;;  %s1479_s10 = int_to_ptr.vmem [resolvable:$true] %s274_s10 }
  0x32   : > { %p1488_p11 = pneg %p1464_p9 }
  0x36   : > { %s1476_s28 = scalar_lea.hbm %s1810_s1, %s1470_s9  ;;  %s1017_s13 = scalar_lea.hbm %s1810_s1, 512 }
  0x37   : > { %s1012_s15 = scalar_lea.hbm %s1476_s28, 64  ;;  %p1018_p1 = scmp.lt.u32.totalorder %s1476_s28, %s1810_s1 }
  0x38   : > { %p1013_p10 = scmp.ne.s32.totalorder %s1476_s28, %s1012_s15  ;;  %p1019_p4 = scmp.lt.u32.totalorder %s1017_s13, %s1012_s15 }
  0x39   : > { %p1021_p2 = scmp.lt.u32.totalorder %s1012_s15, %s1476_s28 }
  0x3a   : > { %p1015_p12 = pnand %p1488_p11, %p1013_p10  ;;  %p1020_p6 = por %p1019_p4, %p1018_p1 }
  0x3c   : > { %p1016_p0 = pneg %p1015_p12  ;;  %p1022_p7 = por %p1021_p2, %p1020_p6 }
  0x3e   : > { %p1023_p3 = pnand %p1022_p7, %p1016_p0 }
  0x40   : > { %1026 = shalt.err (!%p1023_p3)
}
  0x41   : > { %s1027_s8 = scalar_lea.vmem %s1479_s10, 64  ;;  %s1288_s20 = smov [#allocation9]  }
  0x42   : > { %p1028_p10 = scmp.ne.s32.totalorder %s1479_s10, %s1027_s8  ;;  %s1032_s24 = sshll.u32 %s1288_s20, 4  ;;  %s1033_s24 = int_to_ptr.vmem [resolvable:$false] %s1032_s24 }
  0x43   : > { %s1034_s5 = scalar_lea.vmem %s1033_s24, 128  ;;  %p1035_p13 = scmp.lt.s32.totalorder %s1479_s10, %s1033_s24 }
  0x44   : > { %p1030_p12 = pnand %p1028_p10, %p1488_p11  ;;  %p1036_p8 = scmp.lt.s32.totalorder %s1034_s5, %s1027_s8 }
  0x46   : > { %p1031_p5 = pneg %p1030_p12  ;;  %p1037_p4 = por %p1036_p8, %p1035_p13 }
  0x48   : > { %p1038_p1 = pnand %p1037_p4, %p1031_p5 }
  0x4a   : > { %1041 = shalt.err (!%p1038_p1)
}
  0x4b   : > { %874 = dma.hbm_to_vmem [thread:$0]  (!%p1464_p9), %s1476_s28, 64, %s1479_s10, %s1482_s30  }
  0x4c   : > { %p318_p2 = scmp.lt.s32.totalorder %s1286_s6, 9  ;;  %p1812_p6 = scmp.ge.s32.totalorder %s1286_s6, 1 }
  0x4d   : > { %s1523_s8 = scalar_lea.hbm %s1766_s0, %s1470_s9  ;;  %s243_s20 = scalar_lea.vmem [#allocation6], %s1457_s16 }
  0x4e   : > { %p1515_p7 = pnand %p1812_p6, %p318_p2  ;;  %s253_s24 = sshll.u32 %s243_s20, 4  ;;  %s254_s24 = int_to_ptr.vmem [resolvable:$true] %s253_s24 }
  0x4f   : > { %s1814_s5 = sand.u32 1, %s1266_s26   ;;  %s1042_s10 = scalar_lea.hbm %s1523_s8, 64 }
  0x50   : > { %s1813_s18 = scalar_select %p1515_p7, 1, 0 }
  0x51   : > { %s240_s28 = scalar_lea.sflag [#allocation7], %s1814_s5  ;;  %p1043_p8 = scmp.ne.s32.totalorder %s1523_s8, %s1042_s10 }
  0x52   : > { %s1047_s15 = scalar_lea.hbm %s1766_s0, 512  ;;  %p1048_p3 = scmp.lt.u32.totalorder %s1523_s8, %s1766_s0 }
  0x53   : > { %p1045_p13 = pnand %p1043_p8, %p1488_p11  ;;  %p1049_p0 = scmp.lt.u32.totalorder %s1047_s15, %s1042_s10 }
  0x54   : > { %p1051_p12 = scmp.lt.u32.totalorder %s1042_s10, %s1523_s8 }
  0x55   : > { %p1046_p5 = pneg %p1045_p13  ;;  %p1050_p10 = por %p1049_p0, %p1048_p3 }
  0x57   : > { %p1052_p4 = por %p1051_p12, %p1050_p10 }
  0x59   : > { %p1053_p1 = pnand %p1052_p4, %p1046_p5 }
  0x5b   : > { %1056 = shalt.err (!%p1053_p1)
}
  0x5c   : > { %s1057_s20 = scalar_lea.vmem %s254_s24, 64  ;;  %s1289_s5 = smov [#allocation6]  }
  0x5d   : > { %p1058_p2 = scmp.ne.s32.totalorder %s254_s24, %s1057_s20  ;;  %s1062_s26 = sshll.u32 %s1289_s5, 4  ;;  %s1063_s26 = int_to_ptr.vmem [resolvable:$false] %s1062_s26 }
  0x5e   : > { %s1064_s1 = scalar_lea.vmem %s1063_s26, 128  ;;  %p1065_p13 = scmp.lt.s32.totalorder %s254_s24, %s1063_s26 }
  0x5f   : > { %p1060_p6 = pnand %p1058_p2, %p1488_p11  ;;  %p1066_p7 = scmp.lt.s32.totalorder %s1064_s1, %s1057_s20 }
  0x61   : > { %p1061_p8 = pneg %p1060_p6  ;;  %p1067_p9 = por %p1066_p7, %p1065_p13 }
  0x63   : > { %p1068_p0 = pnand %p1067_p9, %p1061_p8 }
  0x65   : > { %1071 = shalt.err (!%p1068_p0)
}
  0x66   : > { %p1815_p3 = scmp.ne.s32.totalorder %s1809_s11, 0  ;;  %s1549_s10 = scalar_lea.hbm %s1768_s2, %s1470_s9 }
  0x67   : > { %s285_s26 = scalar_lea.vmem [#allocation11], %s1457_s16  ;;  %s1072_s13 = scalar_lea.hbm %s1549_s10, 64 }
  0x68   : > { %871 = dma.hbm_to_vmem [thread:$0]  (!%p1815_p3), %s1523_s8, 64, %s254_s24, %s240_s28  }
  0x69   : > { %s295_s15 = sshll.u32 %s285_s26, 4  ;;  %p1073_p9 = scmp.ne.s32.totalorder %s1549_s10, %s1072_s13  ;;  %s296_s15 = int_to_ptr.vmem [resolvable:$true] %s295_s15 }
  0x6a   : > { %s1077_s8 = scalar_lea.hbm %s1768_s2, 512  ;;  %p1078_p10 = scmp.lt.u32.totalorder %s1549_s10, %s1768_s2 }
  0x6b   : > { %p1075_p7 = pnand %p1073_p9, %p1488_p11  ;;  %p1079_p12 = scmp.lt.u32.totalorder %s1077_s8, %s1072_s13 }
  0x6c   : > { %p1081_p1 = scmp.lt.u32.totalorder %s1072_s13, %s1549_s10 }
  0x6d   : > { %p1076_p5 = pneg %p1075_p7  ;;  %p1080_p4 = por %p1079_p12, %p1078_p10 }
  0x6f   : > { %p1082_p2 = por %p1081_p1, %p1080_p4 }
  0x71   : > { %p1083_p6 = pnand %p1082_p2, %p1076_p5 }
  0x73   : > { %1086 = shalt.err (!%p1083_p6)
}
  0x74   : > { %s1087_s9 = scalar_lea.vmem %s296_s15, 64  ;;  %s1290_s16 = smov [#allocation11]  }
  0x75   : > { %p1088_p8 = scmp.ne.s32.totalorder %s296_s15, %s1087_s9  ;;  %s1092_s1 = sshll.u32 %s1290_s16, 4  ;;  %s1093_s1 = int_to_ptr.vmem [resolvable:$false] %s1092_s1 }
  0x76   : > { %s1094_s4 = scalar_lea.vmem %s1093_s1, 128  ;;  %p1095_p9 = scmp.lt.s32.totalorder %s296_s15, %s1093_s1 }
  0x77   : > { %p1090_p13 = pnand %p1088_p8, %p1488_p11  ;;  %p1096_p7 = scmp.lt.s32.totalorder %s1094_s4, %s1087_s9 }
  0x79   : > { %p1091_p0 = pneg %p1090_p13  ;;  %p1097_p3 = por %p1096_p7, %p1095_p9 }
  0x7b   : > { %p1098_p10 = pnand %p1097_p3, %p1091_p0 }
  0x7d   : > { %1101 = shalt.err (!%p1098_p10)
}
  0x7e   : > { %p1816_p12 = scmp.ne.s32.totalorder %s1809_s11, 0  ;;  %s150_s17 = sadd.s32 1, %s1254_s23 }
  0x7f   : > { %p1817_p11 = scmp.eq.s32.totalorder %s1411_s12, 0  ;;  %p157_p3 = scmp.ne.s32.totalorder %s1254_s23, %s1250_s22 }
  0x80   : > { %877 = dma.hbm_to_vmem [thread:$0]  (!%p1816_p12), %s1549_s10, 64, %s296_s15, %s1482_s30  }
  0x81   : > { %s1574_s27 = scalar_select %p1817_p11, %s1254_s23, %s150_s17  }
  0x82   : > { %p163_p5 = scmp.ne.s32.totalorder %s1250_s22, %s1246_s21  ;;  %s302_s11 = sand.u32 1, %s1254_s23  }
  0x83   : > { %s816_s26 = sshll.u32 %s1278_s29, 6  ;;  %p1818_p4 = scmp.eq.s32.totalorder %s1286_s6, 0 }
  0x84   : > { %p1819_p2 = scmp.eq.s32.totalorder %s1397_s7, 0  ;;  %s815_s20 = sshll.u32 %s302_s11, 2 }
  0x85   : > { %p159_p1 = por %p157_p3, %p1818_p4  ;;  %s1593_s30 = scalar_lea.hbm %s1769_s3, %s816_s26 }
  0x86   : > { %p1586_p6 = por %p163_p5, %p1819_p2  ;;  %s306_s21 = scalar_lea.vmem [#allocation12], %s815_s20 }
  0x87   : > { %s313_s12 = sshll.u32 %s306_s21, 4  ;;  %p1821_p8 = scmp.lt.s32.totalorder %s1286_s6, 8  ;;  %s1601_s12 = int_to_ptr.vmem [resolvable:$true] %s313_s12 }
  0x88   : > { %s303_s15 = scalar_lea.sflag [#allocation13], %s302_s11  ;;  %s1102_s24 = scalar_lea.hbm %s1593_s30, 64 }
  0x89   : > { %p1597_p13 = pnand %p1821_p8, %p159_p1  ;;  %p1103_p0 = scmp.ne.s32.totalorder %s1593_s30, %s1102_s24 }
  0x8a   : > { %s1107_s16 = scalar_lea.hbm %s1769_s3, 256  ;;  %p1108_p12 = scmp.lt.u32.totalorder %s1593_s30, %s1769_s3 }
  0x8b   : > { %p1104_p9 = pneg %p1597_p13  ;;  %p1109_p11 = scmp.lt.u32.totalorder %s1107_s16, %s1102_s24 }
  0x8c   : > { %p1111_p5 = scmp.lt.u32.totalorder %s1102_s24, %s1593_s30 }
  0x8d   : > { %p1105_p7 = pnand %p1104_p9, %p1103_p0  ;;  %p1110_p3 = por %p1109_p11, %p1108_p12 }
  0x8f   : > { %p1106_p10 = pneg %p1105_p7  ;;  %p1112_p4 = por %p1111_p5, %p1110_p3 }
  0x91   : > { %p1113_p1 = pnand %p1112_p4, %p1106_p10 }
  0x93   : > { %1116 = shalt.err (!%p1113_p1)
}
  0x94   : > { %s1117_s17 = scalar_lea.vmem %s1601_s12, 64  ;;  %s1291_s11 = smov [#allocation12]  }
  0x95   : > { %p1118_p2 = scmp.ne.s32.totalorder %s1601_s12, %s1117_s17  ;;  %s1122_s26 = sshll.u32 %s1291_s11, 4  ;;  %s1123_s26 = int_to_ptr.vmem [resolvable:$false] %s1122_s26 }
  0x96   : > { %s1124_s20 = scalar_lea.vmem %s1123_s26, 128  ;;  %p1125_p7 = scmp.lt.s32.totalorder %s1601_s12, %s1123_s26 }
  0x97   : > { %p1120_p8 = pnand %p1118_p2, %p1104_p9  ;;  %p1126_p12 = scmp.lt.s32.totalorder %s1124_s20, %s1117_s17 }
  0x99   : > { %p1121_p0 = pneg %p1120_p8  ;;  %p1127_p11 = por %p1126_p12, %p1125_p7 }
  0x9b   : > { %p1128_p3 = pnand %p1127_p11, %p1121_p0 }
  0x9d   : > { %1131 = shalt.err (!%p1128_p3)
}
  0x9e   : > { %880 = dma.hbm_to_vmem [thread:$0]  (!%p1597_p13), %s1593_s30, 64, %s1601_s12, %s303_s15  }
  0x9f   : > { %p1823_p10 = scmp.ne.s32.totalorder %s1813_s18, 0 }
  0xa0   : > { %s324_s5 = sand.u32 (!%p1823_p10), 1, %s1262_s25   ;;  %p1824_p9 = scmp.ne.s32.totalorder (!%p1823_p10), %s1802_s14, 0 }
  0xa1   : > { %322 = sbr.rel (%p1823_p10) target bundleno = 1248 (0x4e0), region = 40  ;;  %s1631_s8 = sshll.u32 (!%p1823_p10), %s324_s5, 2 }
  0xa2   : > { %s325_s21 = scalar_lea.sflag (!%p1823_p10), [#allocation7], %s324_s5  ;;  %s328_s24 = scalar_lea.vmem (!%p1823_p10), [#allocation6], %s1631_s8 }
  0xa8   : > { %1217 = dma.done.wait (%p1824_p9), %s325_s21, 64  }
  0xa9   : > { %1219 = vsyncadd (%p1824_p9), %s325_s21, 4294967232  ;;  %s333_s30 = sand.u32 1, %s1397_s7   ;;  %s337_s18 = scalar_lea.vmem [#allocation9], %s1631_s8 }
  0xaa   : > { %s334_s12 = scalar_lea.sflag [#allocation10], %s333_s30 }
  0xab   : > { %1221 = dma.done.wait (%p1824_p9), %s334_s12, 128  }
  0xac   : > { %1223 = vsyncadd (%p1824_p9), %s334_s12, 4294967168  ;;  %s351_s10 = sand.u32 1, %s1250_s22   ;;  %s346_s28 = scalar_lea.vmem [#allocation11], %s1631_s8 }
  0xad   : > { %s1645_s15 = sshll.u32 %s351_s10, 2  ;;  %s352_s9 = scalar_lea.sflag [#allocation13], %s351_s10 }
  0xae   : > { %s355_s16 = scalar_lea.vmem [#allocation12], %s1645_s15 }
  0xaf   : > { %1225 = dma.done.wait (%p1586_p6), %s352_s9, 64  }
  0xb0   : > { %1227 = vsyncadd (%p1586_p6), %s352_s9, 4294967232  ;;  %s1825_s7 = sld [smem:[#allocation22_spill]]  ;;  %s394_s14 = sand.u32 1, %s1238_s19   ;;  %vm402_vm0 = vcmask 7168   ;;  %vm405_vm1 = vcmask 64512   ;;  %v1292_v0 = vmov -inf  }
  0xb1   : > { %s1656_s1 = sshll.u32 %s394_s14, 3  ;;  %403 = vst.msk [vmem:[#allocation2] sm:$0xff] %vm402_vm0, %v1292_v0  ;;  %v1293_v1 = vmov 0.0  }
  0xb2   : > { %404 = vst.msk [vmem:[#allocation3] sm:$0xff] %vm402_vm0, %v1293_v1  ;;  %s396_s13 = scalar_lea.vmem [#allocation14], %s1656_s1 }
  0xb3   : > { %406 = vst.msk [vmem:[#allocation4] sm:$0xff] %vm405_vm1, %v1293_v1 }
  0xb6   : > { %p407_p13 = scmp.eq.s32.totalorder %s1825_s7, 0 }
  0xb7   : > { %vm412_vm2 = vcmask (%p407_p13), 261120   ;;  %v1294_v2 = vmov (%p407_p13), 0.0  }
  0xb8   : > { %411 = sbr.rel (!%p407_p13) target bundleno = 191 (0xbf), region = 64  ;;  %413 = vst.msk [vmem:[#allocation5] sm:$0xff] (%p407_p13), %vm412_vm2, %v1294_v2 }
  0xbf PF: > { %840 = vmatprep.subr.bf16.mxu0 %v1293_v1  ;;  %v415_v3 = vld [vmem:[%s337_s18] sm:$0xf]  ;;  %846 = vmatprep.subr.bf16.mxu1 %v1293_v1  ;;  %vm1295_vm3 = vmmov 0   ;;  %v414_v5 = vld [vmem:[%s328_s24] sm:$0xf]  ;;  %v1296_v11 = vmov 0  }
  0xc0   : > { %v422_v4 = vsel %vm405_vm1, %v415_v3, 0  ;;  %842 = vmatprep.mubr.msk.bf16.mxu0 %vm1295_vm3, %v1293_v1  ;;  %848 = vmatprep.mubr.msk.bf16.mxu1 %vm1295_vm3, %v1293_v1  ;;  %v464_v12 = vld [vmem:[#allocation2] sm:$0xff]  ;;  %v416_v16 = vld [vmem:[%s346_s28] sm:$0xf]  ;;  %vm499_vm4 = vcmask 1043456   ;;  %v480_v28 = vld [vmem:[#allocation3] sm:$0xff] }
  0xc1   : > { %841 = vmatpush3.bf16.xpose.msra.mxu0 %v422_v4  ;;  %1004 = vset.pattern.permute.xlu0 %v1296_v11  ;;  %v501_v17 = vsel %vm499_vm4, %v416_v16, 0  ;;  %v560_v21 = vld [vmem:[%s355_s16] sm:$0xf]  ;;  %v488_v34 = vld [vmem:[#allocation4] sm:$0xff]  ;;  %vm608_vm5 = vcmask 261120   ;;  %s1826_s4 = sld [smem:[#allocation22_spill]] }
  0xc2   : > { %1005 = vset.pattern.permute.xlu1 %v1296_v11  ;;  %847 = vmatpush3.bf16.msra.mxu1 %v501_v17  ;;  %v565_v23 = vsel %vm499_vm4, %v560_v21, 0  ;;  %v559_v46 = vld [vmem:[#allocation5] sm:$0xff] }
  0xc3   : > { %852 = vmatprep.subr.bf16.mxu1 %v1293_v1 }
  0xc7   : > { %p827_p6 = scmp.ne.s32.totalorder %s1826_s4, 3 }
  0xc8   : > { %843 = vmatmul.mubr.msk.bf16.vlgmr.msra.gmra.mrb[0].mxu0 %vm405_vm1, %v414_v5  ;;  %s1827_s26 = sld [smem:[#allocation32_spill]] (!%p827_p6) }
  0xce   : > { %v828_v53 = vld [vmem:[%s1827_s26] ss:$0 sm:$0xff] (!%p827_p6) }
 0x19b   : > { %v458_v6 = vpop.f32.mrb[0].mxu0 }
 0x19c   : > { %v844_v7 = vpop.f32.mrb[1].mxu0  ;;  %v465_v8 = vsel %vm405_vm1, %v458_v6, -inf }
 0x19d   : > { %466 = vmax.xlane.f32.xlu0 %v465_v8  ;;  %v461_v9 = vpop.f32.mrb[2].mxu0 }
 0x19e   : > { %v845_v10 = vpop.f32.mrb[3].mxu0 }
 0x22a   : > { %v467_v13 = vpop.xlane.xlu0 %466 }
 0x22b   : > { %v468_v14 = vmax.f32 %v464_v12, %v467_v13 }
 0x22d   : > { %v469_v15 = vsub.f32 %v464_v12, %v468_v14  ;;  %545 = vst.msk [vmem:[#allocation2] sm:$0xff] %vm402_vm0, %v468_v14  ;;  %474 = vperm.xlu0 %1004, %v468_v14  }
 0x22f   : > { %v470_v26 = vmul.f32 1.442695, %v469_v15 }
 0x2ac   : > { %v475_v18 = vpop.permute.xlu0 %474 }
 0x2ad   : > { %v477_v19 = vsub.f32 %v458_v6, %v475_v18 }
 0x2af   : > { %v478_v20 = vmul.f32 1.442695, %v477_v19 }
 0x2b1   : > { %1006 = vpow2.f32 %v478_v20 }
 0x2b2   : > { %1008 = vpow2.f32 %v470_v26 }
 0x2bb   : > { %v1007_v22 = vpop.eup %1006 }
 0x2bc   : > { %v482_v24 = vsel %vm405_vm1, %v1007_v22, 0.0  ;;  %v495_v25 = vpack.c.bf16 %v1007_v22, %v1007_v22  ;;  %v1009_v27 = vpop.eup %1008 }
 0x2bd   : > { %483 = vadd.xlane.f32.xlu1 %v482_v24  ;;  %v481_v29 = vmul.f32 %v1009_v27, %v480_v28 }
 0x2be   : > { %849 = vmatmul.mubr.msk.bf16.vlgmr.msra.gmra.mrb[0].mxu1 %vm405_vm1, %v495_v25 }
 0x2bf   : > { %853 = vmatpush3.bf16.msra.mxu1 %v565_v23  ;;  %854 = vmatprep.mubr.msk.bf16.mxu1 %vm1295_vm3, %v1293_v1 }
 0x2ce   : > { %491 = vperm.xlu1 %1005, %v1009_v27  }
 0x34a   : > { %v484_v30 = vpop.xlane.xlu1 %483 }
 0x34b   : > { %v485_v31 = vadd.f32 %v484_v30, %v481_v29 }
 0x34d   : > { %487 = vst.msk [vmem:[#allocation3] sm:$0xff] %vm402_vm0, %v485_v31 }
 0x34e   : > { %v492_v35 = vpop.permute.xlu1 %491 }
 0x34f   : > { %v494_v36 = vmul.f32 %v492_v35, %v488_v34 }
 0x354   : > { %v549_v32 = vld [vmem:[#allocation3] sm:$0xff] }
 0x355   : > { %1010 = vrcp.f32 %v549_v32 }
 0x35f   : > { %v1011_v33 = vpop.eup %1010 }
 0x360   : > { %554 = vperm.xlu1 %1005, %v1011_v33  }
 0x391   : > { %v537_v37 = vpop.f32.mrb[0].mxu1 }
 0x392   : > { %v543_v38 = vadd.f32 %v537_v37, %v494_v36  ;;  %v850_v39 = vpop.f32.mrb[1].mxu1 }
 0x393   : > { %v540_v40 = vpop.f32.mrb[2].mxu1 }
 0x394   : > { %544 = vst.msk [vmem:[#allocation4] sm:$0xff] %vm405_vm1, %v543_v38  ;;  %v851_v41 = vpop.f32.mrb[3].mxu1 }
 0x39b   : > { %v551_v42 = vld [vmem:[#allocation4] sm:$0xff] }
 0x3df   : > { %v555_v43 = vpop.permute.xlu1 %554 }
 0x3e0   : > { %v557_v44 = vmul.f32 %v555_v43, %v551_v42 }
 0x3e2   : > { %v558_v45 = vpack.c.bf16 %v557_v44, %v557_v44 }
 0x3e4   : > { %855 = vmatmul.mubr.msk.bf16.vlgmr.msra.gmra.mrb[4].mxu1 %vm405_vm1, %v558_v45 }
 0x4b4   : > { %613 = sbr.rel (%p827_p6) target bundleno = 1221 (0x4c5), region = 72 }
 0x4b7   : > { %v601_v47 = vpop.f32.mrb[4].mxu1 }
 0x4b8   : > { %v607_v48 = vadd.f32 %v601_v47, %v559_v46  ;;  %v856_v49 = vpop.f32.mrb[5].mxu1 }
 0x4b9   : > { %v604_v50 = vpop.f32.mrb[6].mxu1 }
 0x4ba   : > { %609 = vst.msk [vmem:[#allocation5] sm:$0xff] %vm608_vm5, %v607_v48  ;;  %v857_v51 = vpop.f32.mrb[7].mxu1 }
 0x4c1   : > { %v614_v52 = vld [vmem:[#allocation5] sm:$0xff] }
 0x4c2   : > { %v622_v54 = vadd.f32 %v828_v53, %v614_v52 }
 0x4c4   : > { %623 = vst.msk [vmem:[%s396_s13] sm:$0xff] %vm608_vm5, %v622_v54 }
 0x4c5 PF: > { %s1828_s20 = sld [smem:[#allocation23_spill]]  ;;  %s1829_s5 = sld [smem:[#allocation29_spill]] }
 0x4c6   : > { %s1830_s30 = sld [smem:[#allocation33_spill]]  ;;  %s639_s10 = sshll.u32 %s396_s13, 4  ;;  %s640_s10 = int_to_ptr.vmem [resolvable:$true] %s639_s10 }
 0x4c7   : > { %s625_s15 = scalar_lea.sflag [#allocation8], %s394_s14  ;;  %s1132_s28 = scalar_lea.vmem %s640_s10, 128 }
 0x4c8   : > { %p1133_p5 = scmp.ne.s32.totalorder %s640_s10, %s1132_s28  ;;  %s1297_s9 = smov [#allocation14]  }
 0x4c9   : > { %s1136_s16 = sshll.u32 %s1297_s9, 4  ;;  %s1137_s16 = int_to_ptr.vmem [resolvable:$false] %s1136_s16 }
 0x4ca   : > { %s1138_s7 = scalar_lea.vmem %s1137_s16, 256  ;;  %p1139_p8 = scmp.lt.s32.totalorder %s640_s10, %s1137_s16 }
 0x4cb   : > { %s830_s8 = sshll.u32 %s1828_s20, 7  ;;  %p1832_p4 = scmp.ne.s32.totalorder %s1829_s5, 0 }
 0x4cc   : > { %s1831_s12 = smov %s1830_s30  ;;  %s1691_s18 = scalar_lea.hbm %s1830_s30, %s830_s8 }
 0x4cd   : > { %p1134_p1 = pnand %p1133_p5, %p1832_p4  ;;  %p1140_p0 = scmp.lt.s32.totalorder %s1138_s7, %s1132_s28 }
 0x4cf   : > { %p1135_p2 = pneg %p1134_p1  ;;  %p1141_p7 = por %p1140_p0, %p1139_p8 }
 0x4d1   : > { %p1142_p12 = pnand %p1141_p7, %p1135_p2 }
 0x4d3   : > { %1145 = shalt.err (!%p1142_p12)
}
 0x4d4   : > { %s1146_s14 = scalar_lea.hbm %s1691_s18, 128  ;;  %s1150_s4 = scalar_lea.hbm %s1831_s12, 256 }
 0x4d5   : > { %p1147_p11 = scmp.ne.s32.totalorder %s1691_s18, %s1146_s14  ;;  %p1151_p9 = scmp.lt.u32.totalorder %s1691_s18, %s1831_s12 }
 0x4d6   : > { %p1152_p13 = scmp.lt.u32.totalorder %s1150_s4, %s1146_s14  ;;  %p1154_p5 = scmp.lt.u32.totalorder %s1146_s14, %s1691_s18 }
 0x4d7   : > { %p1148_p3 = pnand %p1147_p11, %p1832_p4 }
 0x4d8   : > { %p1153_p6 = por %p1152_p13, %p1151_p9 }
 0x4d9   : > { %p1149_p10 = pneg %p1148_p3 }
 0x4da   : > { %p1155_p1 = por %p1154_p5, %p1153_p6 }
 0x4dc   : > { %p1156_p2 = pnand %p1155_p1, %p1149_p10 }
 0x4de   : > { %1159 = shalt.err (!%p1156_p2)
}
 0x4df   : > { %866 = dma.vmem_to_hbm [thread:$0]  (%p1832_p4), %s640_s10, 128, %s1691_s18, %s625_s15  }
 0x4e0 PF: > { %s1833_s26 = sld [smem:[#allocation19_spill]]  ;;  %s1834_s20 = sld [smem:[#allocation30_spill]] }
 0x4e1   : > { %p886_p8 = scmp.ge.s32.totalorder %s1286_s6, 2 }
 0x4e6   : > { %s651_s8 = sand.u32 1, %s1833_s26   ;;  %p1835_p0 = scmp.ne.s32.totalorder %s1834_s20, 0 }
 0x4e7   : > { %s652_s21 = scalar_lea.sflag [#allocation8], %s651_s8 }
 0x4e8   : > { %p882_p7 = pnand %p886_p8, %p1835_p0 }
 0x4ea   : > { %1229 = dma.done.wait (!%p882_p7), %s652_s21, 128  }
 0x4eb   : > { %1231 = vsyncadd (!%p882_p7), %s652_s21, 4294967168  ;;  %s27_s6 = sadd.s32 1, %s1286_s6   ;;  %s1837_s5 = sld [smem:[#allocation20_spill]] }
 0x4ec   : > { %p1719_p12 = scmp.ge.s32.totalorder %s27_s6, 10   ;;  %s1838_s20 = sld [smem:[#allocation27_spill]] }
 0x4ed   : > { %s1839_s30 = sld [smem:[#allocation21_spill]]  ;;  %s1840_s26 = sld [smem:[#allocation28_spill]] }
 0x4ee   : > { %s1841_s28 = sld [smem:[#allocation24_spill]]  ;;  %s1842_s10 = sld [smem:[#allocation25_spill]] }
 0x4ef   : > { %s1843_s15 = sld [smem:[#allocation26_spill]]  ;;  %s1845_s18 = smov %s1238_s19 }
 0x4f0   : > { %s1847_s21 = smov %s1250_s22  ;;  %s1848_s22 = smov %s1254_s23 }
 0x4f1   : > { %s1846_s19 = smov %s1837_s5  ;;  %s1849_s23 = smov %s1574_s27 }
 0x4f2   : > { %s1850_s24 = smov %s1262_s25  ;;  %s1852_s27 = smov %s1278_s29 }
 0x4f3   : > { %s1851_s25 = smov %s1839_s30  ;;  %26 = sbr.rel (!%p1719_p12) target bundleno = 18 (0x12), region = 138 }
 0x4f4   : > { %s1853_s29 = smov %s1842_s10 }
 0x4f5   : > { %s1854_s30 = smov %s1843_s15 }
 0x4fa   :  { %657 = vsyncpa [#allocation7], 1 }
 0x4fb   :  { %659 = vsyncpa [#allocation7 + $0x1], 1 }
 0x4fc   :  { %660 = vsyncpa [#allocation10], 1 }
 0x4fd   :  { %662 = vsyncpa [#allocation10 + $0x1], 1 }
 0x4fe   :  { %663 = vsyncpa [#allocation13], 1 }
 0x4ff   :  { %665 = vsyncpa [#allocation13 + $0x1], 1 }
 0x500   :  { %666 = vsyncpa [#allocation8], 1 }
 0x501   :  { %668 = vsyncpa [#allocation8 + $0x1], 1 }

</bundles_post_ra>
